<compile_context>
chip_gen: v6e
topology: v6e:2x2x1
jax: 0.10.0
libtpu: 0.0.40
codegen_flags: <defaults>
</compile_context>

<pallas_src>
import functools

import jax
import jax.numpy as jnp
import numpy as np
from jax import lax
from jax.experimental import pallas as pl
from jax.experimental.pallas import tpu as pltpu


def _global_pointer_kernel(x_ref, wqk_ref, bqk_ref, cos_ref, sin_ref,
                           mrow_ref, mcol_ref, o_ref, q_scr, k_scr,
                           *, head_size, tq, tk, tril_mask, use_rope,
                           use_pad_mask, tril_const):
    """grid = (batch, head, q_tile, k_tile)."""
    D = head_size
    half = D // 2
    qt = pl.program_id(2)
    kt = pl.program_id(3)

    # ---- once per (batch, head): fused q|k projection + RoPE into VMEM scratch ----
    @pl.when(jnp.logical_and(qt == 0, kt == 0))
    def _project():
        x = x_ref[0]                                  # (S, H)   bf16
        w = wqk_ref[0]                                # (H, 2D)  bf16, q half pre-scaled
        proj = jnp.dot(x, w, preferred_element_type=jnp.float32) + bqk_ref[0]  # (S,2D) f32
        q, k = proj[:, :D], proj[:, D:]
        if use_rope:
            cos = cos_ref[...]                        # (S, D//2)
            sin = sin_ref[...]
            q1, q2 = q[:, :half], q[:, half:]
            k1, k2 = k[:, :half], k[:, half:]
            q = jnp.concatenate([q1 * cos - q2 * sin, q2 * cos + q1 * sin], axis=-1)
            k = jnp.concatenate([k1 * cos - k2 * sin, k2 * cos + k1 * sin], axis=-1)
        q_scr[...] = q.astype(q_scr.dtype)            # bf16 for the logits MXU matmul
        k_scr[...] = k.astype(k_scr.dtype)

    # ---- per (q-tile, k-tile): one MXU matmul + fused masking epilogue ----
    qoff = pl.multiple_of(qt * tq, tq)
    koff = pl.multiple_of(kt * tk, tk)
    q_tile = q_scr[pl.ds(qoff, tq), :]                # (tq, D) bf16 (already / sqrt(D))
    k_tile = k_scr[pl.ds(koff, tk), :]                # (tk, D) bf16
    logits = lax.dot_general(q_tile, k_tile, (((1,), (1,)), ((), ())),
                             preferred_element_type=jnp.float32)   # (tq, tk) f32

    if tril_mask:
        i = lax.broadcasted_iota(jnp.int32, (tq, tk), 0) + qt * tq
        j = lax.broadcasted_iota(jnp.int32, (tq, tk), 1) + kt * tk
        logits = jnp.where(i > j, logits - tril_const, logits)

    if use_pad_mask:
        bad = jnp.logical_or(mrow_ref[0] == 0, mcol_ref[0] == 0)    # (tq,1)|(1,tk)
        logits = jnp.where(bad, -jnp.inf, logits)

    o_ref[0, 0] = logits.astype(o_ref.dtype)


def _choose_tile(s, target):
    t = min(target, s)
    while t > 8 and s % t:
        t //= 2
    if s % t:
        t = s
    return t


def global_pointer(x, weight, bias, mask=None, *, heads, head_size,
                   rope=True, tril_mask=True, block_q=256, block_k=256,
                   compute_dtype=jnp.bfloat16, out_dtype=jnp.float32):
    """Pallas GlobalPointer. x: [B,S,H], weight: [H, heads*2*D], bias: [heads*2*D]."""
    B, S, H = x.shape
    D = head_size
    scale = 1.0 / (D ** 0.5)

    # torch.chunk(.., heads, dim=-1) + stack(dim=-2) == reshape to (.., heads, 2D)
    w = weight.reshape(H, heads, 2 * D).astype(jnp.float32)
    wq = jnp.transpose(w[:, :, :D], (1, 0, 2))                    # (heads, H, D)
    wk = jnp.transpose(w[:, :, D:], (1, 0, 2))
    b = bias.reshape(heads, 1, 2 * D).astype(jnp.float32)
    bq, bk = b[:, :, :D], b[:, :, D:]

    # de-interleave feature pairs so interleaved RoPE becomes a half-split rotation
    perm = jnp.concatenate([jnp.arange(0, D, 2), jnp.arange(1, D, 2)])
    wq, wk = wq[:, :, perm], wk[:, :, perm]
    bq, bk = bq[:, :, perm], bk[:, :, perm]

    # fold the 1/sqrt(D) output scale into the q projection (kills an (S,S) VPU pass)
    wq = wq * scale
    bq = bq * scale

    # fuse q|k into one weight: single MXU matmul per head with N = 2D lanes
    wqk = jnp.concatenate([wq, wk], axis=-1).astype(compute_dtype)   # (heads, H, 2D) bf16
    bqk = jnp.concatenate([bq, bk], axis=-1)                         # (heads, 1, 2D) f32

    # RoPE tables (nlpcol RotaryPositionalEmbedding, adjacent/interleaved pairs)
    pos = jnp.arange(S, dtype=jnp.float32)
    inv_freq = 10000.0 ** (-jnp.arange(0, D, 2, dtype=jnp.float32) / D)
    ang = pos[:, None] * inv_freq[None, :]                           # (S, D//2)
    cos_t, sin_t = jnp.cos(ang), jnp.sin(ang)

    use_pad_mask = mask is not None
    if mask is None:
        mask = jnp.ones((B, S), dtype=jnp.float32)
    mask = mask.astype(jnp.float32)
    mrow = mask[:, :, None]                                          # (B, S, 1)
    mcol = mask[:, None, :]                                          # (B, 1, S)

    tq = _choose_tile(S, block_q)
    tk = _choose_tile(S, block_k)
    n_q, n_k = S // tq, S // tk

    # explicit VMEM budget (double-buffered I/O blocks + persistent scratch)
    bf = jnp.dtype(compute_dtype).itemsize
    of = jnp.dtype(out_dtype).itemsize
    est = 2 * (S * H * bf + H * 2 * D * bf + 2 * D * 4 + 2 * S * (D // 2) * 4
               + tq * 4 + tk * 4 + tq * tk * of) + 2 * S * D * bf
    vmem_limit = int(min(max(2 * est, 32 * 1024 * 1024), 100 * 1024 * 1024))

    kernel = functools.partial(
        _global_pointer_kernel, head_size=D, tq=tq, tk=tk, tril_mask=tril_mask,
        use_rope=rope, use_pad_mask=use_pad_mask,
        tril_const=float(1e12 * scale))

    # TODO(synk): for v6e/v7x (256-wide MXU) a further win is processing 2-4 heads
    # per grid step (weight block (hp, H, 2D), scratch (hp, S, D)) to reach N>=256.
    out = pl.pallas_call(
        kernel,
        out_shape=jax.ShapeDtypeStruct((B, heads, S, S), out_dtype),
        grid_spec=pltpu.PrefetchScalarGridSpec(
            num_scalar_prefetch=0,
            grid=(B, heads, n_q, n_k),
            in_specs=[
                pl.BlockSpec((1, S, H), lambda b, h, i, j: (b, 0, 0)),       # x (resident)
                pl.BlockSpec((1, H, 2 * D), lambda b, h, i, j: (h, 0, 0)),   # fused wq|wk
                pl.BlockSpec((1, 1, 2 * D), lambda b, h, i, j: (h, 0, 0)),   # fused bias
                pl.BlockSpec((S, D // 2), lambda b, h, i, j: (0, 0)),        # cos
                pl.BlockSpec((S, D // 2), lambda b, h, i, j: (0, 0)),        # sin
                pl.BlockSpec((1, tq, 1), lambda b, h, i, j: (b, i, 0)),      # mask rows
                pl.BlockSpec((1, 1, tk), lambda b, h, i, j: (b, 0, j)),      # mask cols
            ],
            out_specs=pl.BlockSpec((1, 1, tq, tk), lambda b, h, i, j: (b, h, i, j)),
            scratch_shapes=[
                pltpu.VMEM((S, D), compute_dtype),   # rotated, pre-scaled q (per b,h)
                pltpu.VMEM((S, D), compute_dtype),   # rotated k (per b,h)
            ],
        ),
        compiler_params=pltpu.CompilerParams(
            dimension_semantics=("parallel", "parallel", "arbitrary", "arbitrary"),
            vmem_limit_bytes=vmem_limit),
    )(x.astype(compute_dtype), wqk, bqk, cos_t, sin_t, mrow, mcol)
    return out


def global_pointer_ref(x, weight, bias, mask, *, heads, head_size,
                       rope=True, tril_mask=True):
    """Pure-JAX reference matching the PyTorch forward (interleaved RoPE)."""
    B, S, H = x.shape
    D = head_size
    seq_out = x @ weight + bias
    seq_out = seq_out.reshape(B, S, heads, 2 * D)
    qw, kw = seq_out[..., :D], seq_out[..., D:]
    if rope:
        pos = jnp.arange(S, dtype=jnp.float32)
        inv_freq = 10000.0 ** (-jnp.arange(0, D, 2, dtype=jnp.float32) / D)
        ang = pos[:, None] * inv_freq[None, :]
        cos = jnp.repeat(jnp.cos(ang), 2, axis=-1)[None, :, None, :]
        sin = jnp.repeat(jnp.sin(ang), 2, axis=-1)[None, :, None, :]

        def rot(v):
            v2 = jnp.stack([-v[..., 1::2], v[..., ::2]], axis=-1).reshape(v.shape)
            return v * cos + v2 * sin

        qw, kw = rot(qw), rot(kw)
    logits = jnp.einsum('bmhd,bnhd->bhmn', qw, kw)
    if mask is not None:
        logits = jnp.where(mask[:, None, :, None] == 0, -jnp.inf, logits)
        logits = jnp.where(mask[:, None, None, :] == 0, -jnp.inf, logits)
    if tril_mask:
        tri = jnp.tril(jnp.ones((S, S), jnp.float32), -1)
        logits = logits - tri * 1e12
    return logits / D ** 0.5


if __name__ == "__main__":
    B, S, H = 2, 8, 32
    heads, head_size = 4, 16

    key = jax.random.PRNGKey(0)
    kx, kw, kb = jax.random.split(key, 3)
    x = jax.random.normal(kx, (B, S, H), dtype=jnp.float32)
    weight = jax.random.normal(kw, (H, heads * head_size * 2), dtype=jnp.float32) * 0.05
    bias = jax.random.normal(kb, (heads * head_size * 2,), dtype=jnp.float32) * 0.05
    # padding on the tail of the second example
    mask = jnp.ones((B, S), dtype=jnp.float32).at[1, 6:].set(0.0)

    # the kernel feeds the MXU bf16; compare against the f32 reference evaluated on
    # the same bf16-rounded inputs so the only remaining delta is bf16 rounding of
    # the rotated q/k and accumulation order.
    x_bf = x.astype(jnp.bfloat16).astype(jnp.float32)
    w_bf = weight.astype(jnp.bfloat16).astype(jnp.float32)

    out = global_pointer(x_bf, w_bf, bias, mask, heads=heads, head_size=head_size)
    out = jax.block_until_ready(out)
    assert out.shape == (B, heads, S, S)

    ref = global_pointer_ref(x_bf, w_bf, bias, mask, heads=heads, head_size=head_size)
    np.testing.assert_allclose(np.asarray(out), np.asarray(ref), rtol=2e-2, atol=2e-2)

    print("KERNEL_OK")
</pallas_src>

<mosaic_0001>
module attributes {stable_mosaic.version = 11 : i64} {
  func.func @_global_pointer_kernel(%arg0: i32, %arg1: i32, %arg2: i32, %arg3: i32, %arg4: memref<1x8x32xbf16, #tpu.memory_space<vmem>>, %arg5: memref<1x32x32xbf16, #tpu.memory_space<vmem>>, %arg6: memref<1x1x32xf32, #tpu.memory_space<vmem>>, %arg7: memref<8x8xf32, #tpu.memory_space<vmem>>, %arg8: memref<8x8xf32, #tpu.memory_space<vmem>>, %arg9: memref<1x8x1xf32, #tpu.memory_space<vmem>>, %arg10: memref<1x1x8xf32, #tpu.memory_space<vmem>>, %arg11: memref<1x1x8x8xf32, #tpu.memory_space<vmem>>, %arg12: memref<8x16xbf16, #tpu.memory_space<vmem>>, %arg13: memref<8x16xbf16, #tpu.memory_space<vmem>>) attributes {dimension_semantics = [#tpu.dimension_semantics<parallel>, #tpu.dimension_semantics<parallel>, #tpu.dimension_semantics<arbitrary>, #tpu.dimension_semantics<arbitrary>], iteration_bounds = array<i64: 2, 4, 1, 1>, scalar_prefetch = 0 : i64, scratch_operands = 2 : i64, tpu.core_type = #tpu.core_type<tc>, window_params = [{transform_indices = @transform_0, window_bounds = array<i64: 1, 8, 32>}, {transform_indices = @transform_1, window_bounds = array<i64: 1, 32, 32>}, {transform_indices = @transform_2, window_bounds = array<i64: 1, 1, 32>}, {pipeline_mode = #tpu.pipeline_mode<synchronous>, transform_indices = @transform_3, window_bounds = array<i64: 8, 8>}, {pipeline_mode = #tpu.pipeline_mode<synchronous>, transform_indices = @transform_4, window_bounds = array<i64: 8, 8>}, {transform_indices = @transform_5, window_bounds = array<i64: 1, 8, 1>}, {transform_indices = @transform_6, window_bounds = array<i64: 1, 1, 8>}, {transform_indices = @transform_7, window_bounds = array<i64: 1, 1, 8, 8>}]} {
    %c0_i32 = arith.constant 0 : i32
    %0 = arith.cmpi eq, %arg2, %c0_i32 : i32
    %c0_i32_0 = arith.constant 0 : i32
    %1 = arith.cmpi eq, %arg3, %c0_i32_0 : i32
    %2 = arith.andi %0, %1 : i1
    %3 = arith.extui %2 : i1 to i32
    %c0_i32_1 = arith.constant 0 : i32
    %4 = arith.cmpi ne, %3, %c0_i32_1 : i32
    scf.if %4 {
      %c0_20 = arith.constant 0 : index
      %c0_21 = arith.constant 0 : index
      %c0_22 = arith.constant 0 : index
      %42 = vector.load %arg4[%c0_20, %c0_21, %c0_22] : memref<1x8x32xbf16, #tpu.memory_space<vmem>>, vector<1x8x32xbf16>
      %43 = vector.shape_cast %42 : vector<1x8x32xbf16> to vector<8x32xbf16>
      %c0_23 = arith.constant 0 : index
      %c0_24 = arith.constant 0 : index
      %c0_25 = arith.constant 0 : index
      %44 = vector.load %arg5[%c0_23, %c0_24, %c0_25] : memref<1x32x32xbf16, #tpu.memory_space<vmem>>, vector<1x32x32xbf16>
      %45 = vector.shape_cast %44 : vector<1x32x32xbf16> to vector<32x32xbf16>
      %cst_26 = arith.constant dense<0.000000e+00> : vector<8x32xf32>
      %46 = tpu.matmul %43, %45, %cst_26 {dimension_numbers = #tpu.dot_dimension_numbers<[1], [0], [0], [1], [0, 0, 1, 1], [], []>} : vector<8x32xbf16>, vector<32x32xbf16>, vector<8x32xf32> -> vector<8x32xf32>
      %c0_27 = arith.constant 0 : index
      %c0_28 = arith.constant 0 : index
      %c0_29 = arith.constant 0 : index
      %47 = vector.load %arg6[%c0_27, %c0_28, %c0_29] : memref<1x1x32xf32, #tpu.memory_space<vmem>>, vector<1x1x32xf32>
      %48 = vector.shape_cast %47 : vector<1x1x32xf32> to vector<1x32xf32>
      %49 = vector.broadcast %48 : vector<1x32xf32> to vector<8x32xf32>
      %50 = arith.addf %46, %49 : vector<8x32xf32>
      %51 = vector.extract_strided_slice %50 {offsets = [0, 0], sizes = [8, 16], strides = [1, 1]} : vector<8x32xf32> to vector<8x16xf32>
      %52 = vector.extract_strided_slice %50 {offsets = [0, 16], sizes = [8, 16], strides = [1, 1]} : vector<8x32xf32> to vector<8x16xf32>
      %c0_30 = arith.constant 0 : index
      %c0_31 = arith.constant 0 : index
      %53 = vector.load %arg7[%c0_30, %c0_31] : memref<8x8xf32, #tpu.memory_space<vmem>>, vector<8x8xf32>
      %c0_32 = arith.constant 0 : index
      %c0_33 = arith.constant 0 : index
      %54 = vector.load %arg8[%c0_32, %c0_33] : memref<8x8xf32, #tpu.memory_space<vmem>>, vector<8x8xf32>
      %55 = vector.extract_strided_slice %51 {offsets = [0, 0], sizes = [8, 8], strides = [1, 1]} : vector<8x16xf32> to vector<8x8xf32>
      %56 = vector.extract_strided_slice %51 {offsets = [0, 8], sizes = [8, 8], strides = [1, 1]} : vector<8x16xf32> to vector<8x8xf32>
      %57 = vector.extract_strided_slice %52 {offsets = [0, 0], sizes = [8, 8], strides = [1, 1]} : vector<8x16xf32> to vector<8x8xf32>
      %58 = vector.extract_strided_slice %52 {offsets = [0, 8], sizes = [8, 8], strides = [1, 1]} : vector<8x16xf32> to vector<8x8xf32>
      %59 = arith.mulf %55, %53 : vector<8x8xf32>
      %60 = arith.mulf %56, %54 : vector<8x8xf32>
      %61 = arith.subf %59, %60 : vector<8x8xf32>
      %62 = arith.mulf %56, %53 : vector<8x8xf32>
      %63 = arith.mulf %55, %54 : vector<8x8xf32>
      %64 = arith.addf %62, %63 : vector<8x8xf32>
      %65 = tpu.concatenate %61, %64 in 1 : vector<8x8xf32>, vector<8x8xf32> -> vector<8x16xf32>
      %66 = arith.mulf %57, %53 : vector<8x8xf32>
      %67 = arith.mulf %58, %54 : vector<8x8xf32>
      %68 = arith.subf %66, %67 : vector<8x8xf32>
      %69 = arith.mulf %58, %53 : vector<8x8xf32>
      %70 = arith.mulf %57, %54 : vector<8x8xf32>
      %71 = arith.addf %69, %70 : vector<8x8xf32>
      %72 = tpu.concatenate %68, %71 in 1 : vector<8x8xf32>, vector<8x8xf32> -> vector<8x16xf32>
      %73 = arith.truncf %65 : vector<8x16xf32> to vector<8x16xbf16>
      %c0_34 = arith.constant 0 : index
      %c0_35 = arith.constant 0 : index
      %74 = vector.load %arg12[%c0_34, %c0_35] : memref<8x16xbf16, #tpu.memory_space<vmem>>, vector<8x16xbf16>
      tpu.vector_store %arg12[%c0_34, %c0_35], %73 {strides = array<i32>} : memref<8x16xbf16, #tpu.memory_space<vmem>>, vector<8x16xbf16>,
      %75 = arith.truncf %72 : vector<8x16xf32> to vector<8x16xbf16>
      %c0_36 = arith.constant 0 : index
      %c0_37 = arith.constant 0 : index
      %76 = vector.load %arg13[%c0_36, %c0_37] : memref<8x16xbf16, #tpu.memory_space<vmem>>, vector<8x16xbf16>
      tpu.vector_store %arg13[%c0_36, %c0_37], %75 {strides = array<i32>} : memref<8x16xbf16, #tpu.memory_space<vmem>>, vector<8x16xbf16>,
    } else {
    }
    %c8_i32 = arith.constant 8 : i32
    %5 = arith.muli %arg2, %c8_i32 : i32
    %6 = tpu.assume_multiple %5, 8 : i32
    %c8_i32_2 = arith.constant 8 : i32
    %7 = arith.muli %arg3, %c8_i32_2 : i32
    %8 = tpu.assume_multiple %7, 8 : i32
    %9 = arith.index_cast %6 : i32 to index
    %c0 = arith.constant 0 : index
    %10 = vector.load %arg12[%9, %c0] : memref<8x16xbf16, #tpu.memory_space<vmem>>, vector<8x16xbf16>
    %11 = arith.index_cast %8 : i32 to index
    %c0_3 = arith.constant 0 : index
    %12 = vector.load %arg13[%11, %c0_3] : memref<8x16xbf16, #tpu.memory_space<vmem>>, vector<8x16xbf16>
    %cst = arith.constant dense<0.000000e+00> : vector<8x8xf32>
    %13 = tpu.matmul %10, %12, %cst {dimension_numbers = #tpu.dot_dimension_numbers<[1], [1], [0], [0], [0, 0, 1, 0], [], []>} : vector<8x16xbf16>, vector<8x16xbf16>, vector<8x8xf32> -> vector<8x8xf32>
    %14 = tpu.iota {dimensions = array<i32: 0>} : vector<8x8xi32>
    %c8_i32_4 = arith.constant 8 : i32
    %15 = arith.muli %arg2, %c8_i32_4 : i32
    %16 = vector.broadcast %15 : i32 to vector<8x8xi32>
    %17 = arith.addi %14, %16 : vector<8x8xi32>
    %18 = tpu.iota {dimensions = array<i32: 1>} : vector<8x8xi32>
    %c8_i32_5 = arith.constant 8 : i32
    %19 = arith.muli %arg3, %c8_i32_5 : i32
    %20 = vector.broadcast %19 : i32 to vector<8x8xi32>
    %21 = arith.addi %18, %20 : vector<8x8xi32>
    %22 = arith.cmpi sgt, %17, %21 : vector<8x8xi32>
    %cst_6 = arith.constant 2.500000e+11 : f32
    %23 = vector.broadcast %cst_6 : f32 to vector<8x8xf32>
    %24 = arith.subf %13, %23 : vector<8x8xf32>
    %25 = arith.select %22, %24, %13 : vector<8x8xi1>, vector<8x8xf32>
    %c0_7 = arith.constant 0 : index
    %c0_8 = arith.constant 0 : index
    %c0_9 = arith.constant 0 : index
    %26 = vector.load %arg9[%c0_7, %c0_8, %c0_9] : memref<1x8x1xf32, #tpu.memory_space<vmem>>, vector<1x8x1xf32>
    %27 = vector.shape_cast %26 : vector<1x8x1xf32> to vector<8x1xf32>
    %cst_10 = arith.constant 0.000000e+00 : f32
    %28 = vector.broadcast %cst_10 : f32 to vector<8x1xf32>
    %29 = arith.cmpf oeq, %27, %28 : vector<8x1xf32>
    %c0_11 = arith.constant 0 : index
    %c0_12 = arith.constant 0 : index
    %c0_13 = arith.constant 0 : index
    %30 = vector.load %arg10[%c0_11, %c0_12, %c0_13] : memref<1x1x8xf32, #tpu.memory_space<vmem>>, vector<1x1x8xf32>
    %31 = vector.shape_cast %30 : vector<1x1x8xf32> to vector<1x8xf32>
    %cst_14 = arith.constant 0.000000e+00 : f32
    %32 = vector.broadcast %cst_14 : f32 to vector<1x8xf32>
    %33 = arith.cmpf oeq, %31, %32 : vector<1x8xf32>
    %34 = vector.broadcast %29 : vector<8x1xi1> to vector<8x8xi1>
    %35 = vector.broadcast %33 : vector<1x8xi1> to vector<8x8xi1>
    %36 = arith.ori %34, %35 : vector<8x8xi1>
    %cst_15 = arith.constant 0xFF800000 : f32
    %37 = vector.broadcast %cst_15 : f32 to vector<8x8xf32>
    %38 = arith.select %36, %37, %25 : vector<8x8xi1>, vector<8x8xf32>
    %c0_16 = arith.constant 0 : index
    %c0_17 = arith.constant 0 : index
    %c0_18 = arith.constant 0 : index
    %c0_19 = arith.constant 0 : index
    %39 = vector.load %arg11[%c0_16, %c0_17, %c0_18, %c0_19] : memref<1x1x8x8xf32, #tpu.memory_space<vmem>>, vector<1x1x8x8xf32>
    %40 = vector.shape_cast %39 : vector<1x1x8x8xf32> to vector<8x8xf32>
    %41 = vector.shape_cast %38 : vector<8x8xf32> to vector<1x1x8x8xf32>
    tpu.vector_store %arg11[%c0_16, %c0_17, %c0_18, %c0_19], %41 {strides = array<i32>} : memref<1x1x8x8xf32, #tpu.memory_space<vmem>>, vector<1x1x8x8xf32>,
    return
  }
  func.func @transform_0(%arg0: i32, %arg1: i32, %arg2: i32, %arg3: i32) -> (i32, i32, i32) {
    %c0_i32 = arith.constant 0 : i32
    %c0_i32_0 = arith.constant 0 : i32
    %c0_i32_1 = arith.constant 0 : i32
    return %arg0, %c0_i32, %c0_i32_0 : i32, i32, i32
  }
  func.func @transform_1(%arg0: i32, %arg1: i32, %arg2: i32, %arg3: i32) -> (i32, i32, i32) {
    %c0_i32 = arith.constant 0 : i32
    %c0_i32_0 = arith.constant 0 : i32
    %c0_i32_1 = arith.constant 0 : i32
    return %arg1, %c0_i32, %c0_i32_0 : i32, i32, i32
  }
  func.func @transform_2(%arg0: i32, %arg1: i32, %arg2: i32, %arg3: i32) -> (i32, i32, i32) {
    %c0_i32 = arith.constant 0 : i32
    %c0_i32_0 = arith.constant 0 : i32
    %c0_i32_1 = arith.constant 0 : i32
    return %arg1, %c0_i32, %c0_i32_0 : i32, i32, i32
  }
  func.func @transform_3(%arg0: i32, %arg1: i32, %arg2: i32, %arg3: i32) -> (i32, i32) {
    %c0_i32 = arith.constant 0 : i32
    %c0_i32_0 = arith.constant 0 : i32
    %c0_i32_1 = arith.constant 0 : i32
    return %c0_i32, %c0_i32_0 : i32, i32
  }
  func.func @transform_4(%arg0: i32, %arg1: i32, %arg2: i32, %arg3: i32) -> (i32, i32) {
    %c0_i32 = arith.constant 0 : i32
    %c0_i32_0 = arith.constant 0 : i32
    %c0_i32_1 = arith.constant 0 : i32
    return %c0_i32, %c0_i32_0 : i32, i32
  }
  func.func @transform_5(%arg0: i32, %arg1: i32, %arg2: i32, %arg3: i32) -> (i32, i32, i32) {
    %c0_i32 = arith.constant 0 : i32
    %c0_i32_0 = arith.constant 0 : i32
    return %arg0, %arg2, %c0_i32 : i32, i32, i32
  }
  func.func @transform_6(%arg0: i32, %arg1: i32, %arg2: i32, %arg3: i32) -> (i32, i32, i32) {
    %c0_i32 = arith.constant 0 : i32
    %c0_i32_0 = arith.constant 0 : i32
    return %arg0, %c0_i32, %arg3 : i32, i32, i32
  }
  func.func @transform_7(%arg0: i32, %arg1: i32, %arg2: i32, %arg3: i32) -> (i32, i32, i32, i32) {
    %c0_i32 = arith.constant 0 : i32
    return %arg0, %arg1, %arg2, %arg3 : i32, i32, i32, i32
  }
}

</mosaic_0001>

<bundles_post_ra>
// kernel: tpu_custom_call.1
= control target key start
LH: loop header
LB: loop body
LE: loop exit
PB: predicated region body
PF: predicated region fallthrough
CT: control target
= control target key end

     0   :  { %s1495_s0 = inlined_call_operand.vmem [shape: bf16[2,8,32], index: 0, kind: input, shape index: {}]   ;;  %s1496_s1 = inlined_call_operand.hbm [shape: bf16[4,32,32], index: 1, kind: input, shape index: {}]   ;;  %s1497_s2 = inlined_call_operand.hbm [shape: f32[4,1,32], index: 2, kind: input, shape index: {}]   ;;  %s1498_s3 = inlined_call_operand.vmem [shape: f32[8,8], index: 3, kind: input, shape index: {}]   ;;  %s1499_s4 = inlined_call_operand.vmem [shape: f32[8,8], index: 4, kind: input, shape index: {}]   ;;  %s1500_s5 = inlined_call_operand.vmem [shape: f32[2,8,1], index: 5, kind: input, shape index: {}]   ;;  %s1501_s6 = inlined_call_operand.vmem [shape: f32[2,1,8], index: 6, kind: input, shape index: {}]   ;;  %s1502_s7 = inlined_call_operand.hbm [shape: f32[2,4,8,8], index: 7, kind: output, shape index: {}]  }
   0x1   :  { %1510 = sst [smem:[#allocation22_spill]] %s1496_s1 }
   0x2   :  { %12 = vsyncpa [#allocation5], 0 }
   0x3   :  { %14 = vsyncpa [#allocation5 + $0x1], 0 }
   0x4   :  { %15 = vsyncpa [#allocation8], 0 }
   0x5   :  { %17 = vsyncpa [#allocation8 + $0x1], 0 }
   0x6   :  { %18 = vsyncpa [#allocation6], 0 }
   0x7   :  { %20 = vsyncpa [#allocation6 + $0x1], 0  ;;  %s1240_s24 = smov 0   ;;  %s1242_s25 = smov 0  }
   0x8   :  { %s1244_s26 = smov 0   ;;  %s1246_s27 = smov 0  }
   0x9   :  { %s1248_s28 = smov 0   ;;  %s1250_s29 = smov 0  }
   0xa   :  { %s1252_s30 = smov 0   ;;  %s1254_s8 = smov 0  }
   0xb   :  { %s1256_s9 = smov 0   ;;  %s1258_s10 = smov 0  }
   0xc   :  { %s1260_s11 = smov 0  }
   0xd LB: > { %1511 = sst [smem:[#allocation13_spill]] %s1145_s24  ;;  %s835_s12 = sadd.s32 4294967295, %s1185_s11   ;;  %s1185_s11 = sphi %s1260_s11, %s26_s11   ;;  %s1181_s10 = sphi %s1258_s10, %s1535_s10   ;;  %s1177_s9 = sphi %s1256_s9, %s1541_s9   ;;  %s1173_s8 = sphi %s1254_s8, %s1533_s8   ;;  %s1169_s30 = sphi %s1252_s30, %s1540_s30   ;;  %s1165_s29 = sphi %s1250_s29, %s1532_s29   ;;  %s1161_s28 = sphi %s1248_s28, %s1539_s28   ;;  %s1157_s27 = sphi %s1246_s27, %s1538_s27   ;;  %s1153_s26 = sphi %s1244_s26, %s1530_s26   ;;  %s1149_s25 = sphi %s1242_s25, %s1537_s25   ;;  %s1145_s24 = sphi %s1240_s24, %s1536_s24  }
   0xe   : > { %1512 = sst [smem:[#allocation14_spill]] %s1153_s26  ;;  %s836_s13 = sadd.s32 4294967294, %s1185_s11  }
   0xf   : > { %1513 = sst [smem:[#allocation15_spill]] %s1165_s29  ;;  %s48_s14 = sadd.s32 1, %s1177_s9 }
  0x10   : > { %1514 = sst [smem:[#allocation16_spill]] %s1181_s10  ;;  %s52_s15 = sadd.s32 1, %s1181_s10 }
  0x11   : > { %p50_p0 = scmp.ge.s32.totalorder %s48_s14, 4  ;;  %s85_s16 = sadd.s32 1, %s1165_s29 }
  0x12   : > { %p92_p1 = scmp.ne.s32.totalorder %s1165_s29, %s1161_s28  ;;  %p93_p2 = scmp.eq.s32.totalorder %s1185_s11, 0 }
  0x13   : > { %s1543_s14 = smov (%p50_p0, %s48_s14), 0  ;;  %s1545_s15 = smov (!%p50_p0, %s52_s15), %s1181_s10 }
  0x14   : > { %1515 = sst [smem:[#allocation17_spill]] %s1543_s14  ;;  %s82_s17 = ssub.s32 %s1177_s9, %s1543_s14 }
  0x15   : > { %p1306_p3 = por %p93_p2, %p92_p1  ;;  %p54_p4 = scmp.ge.s32.totalorder %s1545_s15, 2 }
  0x16   : > { %p83_p5 = scmp.eq.s32.totalorder %s82_s17, 0  ;;  %p98_p6 = scmp.ne.s32.totalorder %s1161_s28, %s1157_s27 }
  0x17   : > { %p99_p7 = scmp.eq.s32.totalorder %s835_s12, 0  ;;  %s1547_s15 = smov (%p54_p4, %s1545_s15), 0 }
  0x18   : > { %1517 = sst [smem:[#allocation18_spill]] %s1547_s15  ;;  %s232_s21 = ssub.s32 %s1181_s10, %s1547_s15 }
  0x19   : > { %s1314_s19 = scalar_select %p83_p5, %s1165_s29, %s85_s16  }
  0x1a   : > { %p1316_p8 = por %p99_p7, %p98_p6  ;;  %s234_s22 = sor.u32 %s232_s21, %s82_s17 }
  0x1b   : > { %1518 = sst [smem:[#allocation19_spill]] %s1314_s19  ;;  %s241_s23 = sadd.s32 1, %s1153_s26 }
  0x1c   : > { %p239_p9 = scmp.eq.s32.totalorder %s234_s22, 0  ;;  %p251_p10 = scmp.ne.s32.totalorder %s1153_s26, %s1149_s25 }
  0x1d   : > { %p252_p11 = scmp.eq.s32.totalorder %s835_s12, 7  ;;  %p257_p12 = scmp.ne.s32.totalorder %s1149_s25, %s1145_s24 }
  0x1e   : > { %s1328_s27 = scalar_select %p239_p9, %s1153_s26, %s241_s23  }
  0x1f   : > { %p1330_p13 = por %p252_p11, %p251_p10  ;;  %p258_p0 = scmp.eq.s32.totalorder %s836_s13, 7 }
  0x20   : > { %1520 = sst [smem:[#allocation20_spill]] %s1328_s27  ;;  %p896_p1 = scmp.lt.s32.totalorder %s1185_s11, 8 }
  0x21   : > { %p1335_p2 = por %p258_p0, %p257_p12  ;;  %s1340_s17 = sand.u32 1, %s1165_s29  }
  0x22   : > { %s839_s21 = sshll.u32 %s1340_s17, 4  ;;  %s859_s22 = sshll.u32 %s1177_s9, 8 }
  0x23   : > { %s1522_s16 = scalar_select %p1335_p2, 1, 0 }
  0x24   : > { %s1524_s1 = sld [smem:[#allocation22_spill]]  ;;  %s295_s10 = scalar_lea.vmem [#allocation4], %s839_s21 }
  0x25   : > { %1523 = sst [smem:[#allocation21_spill]] %s1522_s16  ;;  %s302_s19 = sshll.u32 %s295_s10, 4  ;;  %s303_s19 = int_to_ptr.vmem [resolvable:$true] %s302_s19 }
  0x26   : > { %p1349_p4 = pnand %p896_p1, %p1306_p3  ;;  %p843_p5 = scmp.ge.s32.totalorder %s1185_s11, 1 }
  0x27   : > { %s292_s29 = scalar_lea.sflag [#allocation5], %s1340_s17  ;;  %s1018_s27 = scalar_lea.vmem %s303_s19, 256 }
  0x28   : > { %p1007_p6 = pneg %p1349_p4  ;;  %p1019_p7 = scmp.ne.s32.totalorder %s303_s19, %s1018_s27 }
  0x29   : > { %s1187_s15 = smov [#allocation4]  }
  0x2a   : > { %s301_s23 = scalar_lea.hbm %s1524_s1, %s859_s22  ;;  %p1021_p9 = pnand %p1019_p7, %p1007_p6 }
  0x2b   : > { %s1023_s10 = sshll.u32 %s1187_s15, 4  ;;  %s1024_s10 = int_to_ptr.vmem [resolvable:$false] %s1023_s10 }
  0x2c   : > { %p1022_p10 = pneg %p1021_p9  ;;  %s1025_s18 = scalar_lea.vmem %s1024_s10, 512 }
  0x2d   : > { %p1026_p3 = scmp.lt.s32.totalorder %s303_s19, %s1024_s10  ;;  %p1027_p11 = scmp.lt.s32.totalorder %s1025_s18, %s1018_s27 }
  0x2f   : > { %p1028_p12 = por %p1027_p11, %p1026_p3 }
  0x31   : > { %p1029_p0 = pnand %p1028_p12, %p1022_p10 }
  0x33   : > { %1032 = shalt.err (!%p1029_p0)
}
  0x34   : > { %s1188_s21 = smov 64   ;;  %s1189_s22 = smov 4  }
  0x35   : > { %888 = dma.hbm_to_vmem [thread:$0]  (!%p1349_p4), %s301_s23, 256, %s303_s19, %s292_s29, %s1188_s21, %s1188_s21, %s1189_s22  }
  0x36   : > { %p346_p1 = scmp.lt.s32.totalorder %s1185_s11, 9  ;;  %s842_s12 = sshll.u32 %s1177_s9, 4 }
  0x37   : > { %s320_s18 = scalar_lea.hbm %s1497_s2, %s842_s12  ;;  %s315_s1 = scalar_lea.vmem [#allocation7], %s1340_s17 }
  0x38   : > { %p1366_p7 = pnand %p843_p5, %p346_p1  ;;  %s322_s26 = sshll.u32 %s315_s1, 4  ;;  %s323_s26 = int_to_ptr.vmem [resolvable:$true] %s322_s26 }
  0x39   : > { %s313_s16 = scalar_lea.sflag [#allocation8], %s1340_s17  ;;  %s1046_s24 = scalar_lea.vmem %s323_s26, 16 }
  0x3a   : > { %p1047_p9 = scmp.ne.s32.totalorder %s323_s26, %s1046_s24  ;;  %s1190_s29 = smov [#allocation7]  }
  0x3b   : > { %s1051_s19 = sshll.u32 %s1190_s29, 4  ;;  %s1052_s19 = int_to_ptr.vmem [resolvable:$false] %s1051_s19 }
  0x3c   : > { %p1049_p10 = pnand %p1047_p9, %p1007_p6  ;;  %s1053_s23 = scalar_lea.vmem %s1052_s19, 32 }
  0x3d   : > { %p1054_p5 = scmp.lt.s32.totalorder %s323_s26, %s1052_s19  ;;  %p1055_p11 = scmp.lt.s32.totalorder %s1053_s23, %s1046_s24 }
  0x3e   : > { %p1050_p3 = pneg %p1049_p10 }
  0x3f   : > { %p1056_p12 = por %p1055_p11, %p1054_p5 }
  0x41   : > { %p1057_p0 = pnand %p1056_p12, %p1050_p3 }
  0x43   : > { %1060 = shalt.err (!%p1057_p0)
}
  0x44   : > { %891 = dma.hbm_to_vmem [thread:$0]  (!%p1349_p4), %s320_s18, 16, %s323_s26, %s313_s16  }
  0x45   : > { %350 = sbr.rel (%p1366_p7) target bundleno = 750 (0x2ee), region = 48  ;;  %s1383_s1 = sand.u32 (!%p1366_p7), 1, %s1161_s28  }
  0x46   : > { %s844_s17 = sshll.u32 (!%p1366_p7), %s1383_s1, 4  ;;  %s353_s21 = scalar_lea.sflag (!%p1366_p7), [#allocation5], %s1383_s1 }
  0x47   : > { %s356_s22 = scalar_lea.vmem (!%p1366_p7), [#allocation4], %s844_s17 }
  0x4a   : > { %1132 = dma.done.wait (%p1316_p8), %s353_s21, 256  }
  0x4b   : > { %1134 = vsyncadd (%p1316_p8), %s353_s21, 4294967040  ;;  %s362_s24 = scalar_lea.sflag [#allocation8], %s1383_s1  ;;  %s364_s26 = scalar_lea.vmem [#allocation7], %s1383_s1 }
  0x4c   : > { %1136 = dma.done.wait (%p1316_p8), %s362_s24, 16  }
  0x4d   : > { %1138 = vsyncadd (%p1316_p8), %s362_s24, 4294967280  ;;  %p416_p4 = scmp.lt.s32.totalorder %s1173_s8, 1  ;;  %v1191_v0 = vmov 0.0   ;;  %vm1192_vm0 = vmmov 0   ;;  %v1003_v1 = vld [vmem:[%s356_s22 + $0x8] sm:$0xff]   ;;  %v1004_v2 = vld [vmem:[%s356_s22] sm:$0xff]   ;;  %v633_v48 = vlaneseq }
  0x4e   : > { %865 = vmatprep.subr.bf16.mxu0 %v1191_v0  ;;  %869 = vmatprep.mubr.msk.bf16.mxu0 %vm1192_vm0, %v1191_v0  ;;  %v509_v3 = vld [vmem:[%s1499_s4] sm:$0xff]  ;;  %s1193_s19 = smov 24   ;;  %s1194_s23 = smov 16   ;;  %vm464_vm1 = vcmask 261120   ;;  %v1198_v28 = vmov 0   ;;  %vm532_vm3 = vcmask 64512  }
  0x4f   : > { %873 = vmatprep.subr.bf16.mxu1 %v1191_v0  ;;  %875 = vmatprep.mubr.msk.bf16.mxu1 %vm1192_vm0, %v1191_v0  ;;  %s1399_s16 = scalar_select %p416_p4, %s1173_s8, 1  ;;  %v1408_v4 = vld [vmem:[%s1498_s3] sm:$0xff]  ;;  %vm570_vm4 = vcmask 125952   ;;  %vm586_vm5 = vcmask 130048   ;;  %v634_v50 = vshrl.u32 %v633_v48, 7  ;;  %v638_v55 = vand.u32 127, %v633_v48 }
  0x50   : > { %866 = vmatpush3.bf16.msra.mxu0 %v1003_v1  ;;  %538 = vrot.lane.b32.xlu0 %v509_v3, %s1193_s19  ;;  %v848_v7 = vld [vmem:[%s364_s26] ss:$0 sm:$0xff]  ;;  %s1195_s1 = smov 8   ;;  %s1196_s17 = smov 120  }
  0x51   : > { %s846_s13 = sshll.u32 %s1399_s16, 2  ;;  %867 = vmatprep.subr.bf16.mxu0 %v1191_v0  ;;  %534 = vrot.lane.b32.xlu1 %v1408_v4, %s1194_s23  ;;  %s1197_s21 = smov 112   ;;  %v656_v51 = vsub.s32 0, %v634_v50  ;;  %vm641_vm9 = vcmp.gt.s32.totalorder %v634_v50, %v638_v55 }
  0x52   : > { %s419_s29 = scalar_lea.vmem %s1495_s0, %s846_s13  ;;  %s847_s22 = sshll.u32 %s1399_s16, 3  ;;  %1001 = vset.pattern.permute.xlu1 %v1198_v28  ;;  %1002 = vset.pattern.permute.xlu0 %v1198_v28 }
  0x53   : > { %v440_v5 = vld [vmem:[%s419_s29] sm:$0xf]  ;;  %s426_s13 = scalar_lea.vmem %s1500_s5, %s847_s22  ;;  %s432_s20 = scalar_lea.vmem %s1501_s6, %s1399_s16 }
  0x54   : > { %868 = vmatpush3.bf16.msra.mxu0 %v1004_v2  ;;  %551 = vrot.lane.b32.xlu0 %v509_v3, %s1194_s23  ;;  %v644_v29 = vld [vmem:[%s426_s13] sm:$0xff]  ;;  %s413_s27 = sand.u32 1, %s1149_s25   ;;  %s855_s18 = sshll.u32 %s1173_s8, 2 }
  0x55   : > { %547 = vrot.lane.b32.xlu1 %v1408_v4, %s1193_s19  ;;  %vm645_vm2 = vcmp.eq.f32.partialorder %v644_v29, 0.0  ;;  %v646_v49 = vld [vmem:[%s432_s20] sm:$0x1]  ;;  %s845_s10 = sshll.u32 %s413_s27, 3  ;;  %s677_s29 = sadd.s32 %s1169_s30, %s855_s18 }
  0x56   : > { %v648_v30 = vsel %vm645_vm2, 1, %v1198_v28  ;;  %vm647_vm6 = vcmp.eq.f32.partialorder %v646_v49, 0.0  ;;  %s856_s19 = sshll.u32 %s677_s29, 7  ;;  %s415_s23 = scalar_lea.vmem [#allocation9], %s845_s10 }
  0x57   : > { %870 = vmatmul.mubr.msk.bf16.vlgmr.msra.gmra.mxu0 %vm464_vm1, %v440_v5  ;;  %v653_v52 = vsel %vm647_vm6, 1, %v1198_v28  ;;  %s681_s16 = sshll.u32 %s415_s23, 4  ;;  %s664_s30 = scalar_lea.sflag [#allocation6], %s413_s27  ;;  %s1435_s16 = int_to_ptr.vmem [resolvable:$true] %s681_s16 }
  0x58   : > { %v657_v53 = vrot.slane %v653_v52, %v656_v51  ;;  %s1061_s8 = scalar_lea.vmem %s1435_s16, 128  ;;  %s1199_s22 = smov [#allocation9]  }
  0x59   : > { %p1062_p8 = scmp.ne.s32.totalorder %s1435_s16, %s1061_s8  ;;  %s1065_s24 = sshll.u32 %s1199_s22, 4  ;;  %s1066_s24 = int_to_ptr.vmem [resolvable:$false] %s1065_s24 }
  0x5a   : > { %vm658_vm7 = vcmp.eq.s32.totalorder %v657_v53, 1  ;;  %s1067_s26 = scalar_lea.vmem %s1066_s24, 256  ;;  %p1068_p7 = scmp.lt.s32.totalorder %s1435_s16, %s1066_s24 }
  0x5b   : > { %p1063_p6 = pnand %p1062_p8, %p1330_p13  ;;  %p1069_p9 = scmp.lt.s32.totalorder %s1067_s26, %s1061_s8 }
  0x5d   : > { %p1064_p1 = pneg %p1063_p6  ;;  %p1070_p10 = por %p1069_p9, %p1068_p7 }
  0x5f   : > { %p1071_p3 = pnand %p1070_p10, %p1064_p1 }
  0xc2   : > { %v539_v6 = vpop.permute.xlu0 %538 }
  0xc3   : > { %v535_v17 = vpop.permute.xlu1 %534 }
  0xc6   : > { %v552_v9 = vpop.permute.xlu0 %551 }
  0xc7   : > { %v548_v18 = vpop.permute.xlu1 %547 }
 0x117   : > { %v502_v8 = vpop.f32.mrf.mxu0 }
 0x118   : > { %v503_v10 = vadd.f32 %v848_v7, %v502_v8 }
 0x119   : > { %v871_v11 = vpop.f32.mrf.mxu0 }
 0x11a   : > { %v554_v12 = vmul.f32 %v552_v9, %v503_v10  ;;  %v541_v13 = vmul.f32 %v539_v6, %v503_v10  ;;  %v526_v16 = vmul.f32 %v509_v3, %v503_v10  ;;  %v550_v19 = vmul.f32 %v548_v18, %v503_v10 }
 0x11b   : > { %v505_v14 = vpop.f32.mrf.mxu0  ;;  %v537_v20 = vmul.f32 %v535_v17, %v503_v10  ;;  %v510_v38 = vmul.f32 %v1408_v4, %v503_v10 }
 0x11c   : > { %556 = vrot.lane.b32.xlu1 %v554_v12, %s1195_s1  ;;  %543 = vrot.lane.b32.xlu0 %v541_v13, %s1196_s17 }
 0x11d   : > { %v872_v15 = vpop.f32.mrf.mxu0 }
 0x120   : > { %512 = vrot.lane.b32.xlu0 %v509_v3, %s1195_s1 }
 0x124   : > { %522 = vrot.lane.b32.xlu0 %v1408_v4, %s1195_s1 }
 0x128   : > { %528 = vrot.lane.b32.xlu0 %v526_v16, %s1195_s1 }
 0x18e   : > { %v557_v21 = vpop.permute.xlu1 %556  ;;  %v544_v22 = vpop.permute.xlu0 %543 }
 0x18f   : > { %v559_v23 = vadd.f32 %v557_v21, %v550_v19  ;;  %v546_v24 = vsub.f32 %v537_v20, %v544_v22 }
 0x191   : > { %v996_v25 = vpack.i.bf16 %v559_v23, %v546_v24 }
 0x192   : > { %v513_v26 = vpop.permute.xlu0 %512 }
 0x193   : > { %997 = vrot.lane.b32.xlu1 %v996_v25, %s1197_s21  ;;  %v515_v27 = vmul.f32 %v513_v26, %v503_v10  ;;  %s1433_s21 = scalar_lea.hbm %s1502_s7, %s856_s19 }
 0x196   : > { %v523_v31 = vpop.permute.xlu0 %522 }
 0x197   : > { %517 = vrot.lane.b32.xlu1 %v515_v27, %s1196_s17  ;;  %v525_v36 = vmul.f32 %v523_v31, %v503_v10 }
 0x19a   : > { %v529_v35 = vpop.permute.xlu0 %528 }
 0x19b   : > { %650 = vperm.xlu1 %1001, %v648_v30   ;;  %v531_v41 = vadd.f32 %v529_v35, %v525_v36 }
 0x205   : > { %v998_v32 = vpop.permute.xlu1 %997 }
 0x206   : > { %v1000_v33 = vunpack.i.h.bf16 %v998_v32  ;;  %v999_v34 = vunpack.i.l.bf16 %v998_v32 }
 0x208   : > { %v568_v37 = vsel %vm532_vm3, %v999_v34, %v1000_v33 }
 0x209   : > { %v572_v39 = vpack.c.bf16 %v568_v37, %v568_v37  ;;  %v518_v40 = vpop.permute.xlu1 %517 }
 0x20a   : > { %v520_v42 = vsub.f32 %v510_v38, %v518_v40 }
 0x20b   : > { %573 = vst.msk [vmem:[#allocation3] sm:$0xf] %vm570_vm4, %v572_v39 }
 0x20c   : > { %v533_v43 = vsel %vm532_vm3, %v520_v42, %v531_v41 }
 0x20d   : > { %v569_v44 = vpack.c.bf16 %v533_v43, %v533_v43 }
 0x20f   : > { %571 = vst.msk [vmem:[#allocation2] sm:$0xf] %vm570_vm4, %v569_v44 }
 0x212   : > { %v585_v45 = vld [vmem:[#allocation3] sm:$0xf] }
 0x213   : > { %v591_v46 = vsel %vm586_vm5, %v585_v45, 0 }
 0x214   : > { %874 = vmatpush3.bf16.xpose.msra.mxu1 %v591_v46 }
 0x216   : > { %v580_v47 = vld [vmem:[#allocation2] sm:$0xf]  ;;  %v651_v54 = vpop.permute.xlu1 %650 }
 0x217   : > { %vm652_vm8 = vcmp.eq.s32.totalorder %v651_v54, 1 }
 0x218   : > { %vm659_vm10 = vmor %vm652_vm8, %vm658_vm7 }
 0x21b   : > { %876 = vmatmul.mubr.msk.bf16.vlgmr.msra.gmra.mxu1 %vm586_vm5, %v580_v47 }
 0x2db   : > { %v627_v56 = vpop.f32.mrf.mxu1 }
 0x2dc   : > { %v853_v57 = vadd.f32 -2.5e+11, %v627_v56 }
 0x2dd   : > { %v877_v58 = vpop.f32.mrf.mxu1 }
 0x2de   : > { %v643_v59 = vsel %vm641_vm9, %v853_v57, %v627_v56 }
 0x2df   : > { %v660_v60 = vsel %vm659_vm10, -inf, %v643_v59  ;;  %v630_v61 = vpop.f32.mrf.mxu1 }
 0x2e0   : > { %662 = vst.msk [vmem:[%s415_s23] sm:$0xff] %vm532_vm3, %v660_v60 }
 0x2e1   : > { %v878_v62 = vpop.f32.mrf.mxu1 }
 0x2e2   : > { %1074 = shalt.err (!%p1071_p3)
}
 0x2e3   : > { %s1075_s13 = scalar_lea.hbm %s1433_s21, 128  ;;  %s1079_s20 = scalar_lea.hbm %s1502_s7, 1024 }
 0x2e4   : > { %p1076_p5 = scmp.ne.s32.totalorder %s1433_s21, %s1075_s13  ;;  %p1080_p0 = scmp.lt.s32.totalorder %s1433_s21, %s1502_s7 }
 0x2e5   : > { %p1081_p4 = scmp.lt.s32.totalorder %s1079_s20, %s1075_s13 }
 0x2e6   : > { %p1077_p11 = pnand %p1076_p5, %p1330_p13 }
 0x2e7   : > { %p1082_p8 = por %p1081_p4, %p1080_p0 }
 0x2e8   : > { %p1078_p12 = pneg %p1077_p11 }
 0x2ea   : > { %p1083_p6 = pnand %p1082_p8, %p1078_p12 }
 0x2ec   : > { %1086 = shalt.err (!%p1083_p6)
}
 0x2ed   : > { %883 = dma.vmem_to_hbm [thread:$0]  (%p1330_p13), %s1435_s16, 128, %s1433_s21, %s664_s30  }
 0x2ee PF: > { %s1527_s18 = sld [smem:[#allocation13_spill]]  ;;  %p897_p1 = scmp.ge.s32.totalorder %s1185_s11, 2 }
 0x2f0   : > { %p893_p7 = pnand %p897_p1, %p1335_p2 }
 0x2f2   : > { %p894_p9 = pneg %p893_p7 }
 0x2f4   : > { %s693_s19 = sand.u32 1, %s1527_s18  }
 0x2f5   : > { %s694_s23 = scalar_lea.sflag [#allocation6], %s693_s19 }
 0x2f6   : > { %1140 = dma.done.wait (%p894_p9), %s694_s23, 128  }
 0x2f7   : > { %1142 = vsyncadd (%p894_p9), %s694_s23, 4294967168  ;;  %s26_s11 = sadd.s32 1, %s1185_s11   ;;  %s1529_s14 = sld [smem:[#allocation14_spill]] }
 0x2f8   : > { %p23_p10 = scmp.ge.s32.totalorder %s26_s11, 10   ;;  %s1530_s26 = sld [smem:[#allocation20_spill]] }
 0x2f9   : > { %s1531_s16 = sld [smem:[#allocation15_spill]]  ;;  %s1536_s24 = smov %s1149_s25 }
 0x2fa   : > { %s1532_s29 = sld [smem:[#allocation19_spill]]  ;;  %s1538_s27 = smov %s1161_s28 }
 0x2fb   : > { %s1533_s8 = sld [smem:[#allocation16_spill]]  ;;  %s1540_s30 = smov %s1177_s9 }
 0x2fc   : > { %s1534_s1 = sld [smem:[#allocation17_spill]] }
 0x2fd   : > { %s1535_s10 = sld [smem:[#allocation18_spill]]  ;;  %s1537_s25 = smov %s1529_s14 }
 0x2fe   :  { %25 = sbr.rel (!%p23_p10) target bundleno = 13 (0xd), region = 121 }
 0x2ff   : > { %s1539_s28 = smov %s1531_s16 }
 0x302   : > { %s1541_s9 = smov %s1534_s1 }
 0x303   :  { %699 = vsyncpa [#allocation5], 1 }
 0x304   :  { %701 = vsyncpa [#allocation5 + $0x1], 1 }
 0x305   :  { %702 = vsyncpa [#allocation8], 1 }
 0x306   :  { %704 = vsyncpa [#allocation8 + $0x1], 1 }
 0x307   :  { %705 = vsyncpa [#allocation6], 1 }
 0x308   :  { %707 = vsyncpa [#allocation6 + $0x1], 1 }

</bundles_post_ra>
